<compile_context>
chip_gen: v5e
topology: v5e:2x2
jax: 0.10.0
libtpu: 0.0.40
codegen_flags: <defaults>
</compile_context>

<pallas_src>
import functools

import jax
import jax.numpy as jnp
from jax.experimental import pallas as pl
from jax.experimental.pallas import tpu as pltpu

EPS = 1e-5                      # PyTorch LayerNorm default
COMPUTE_DTYPE = jnp.bfloat16    # MXU operand dtype; accumulation stays float32


def _layer_norm(x, gamma, beta):
    mean = jnp.mean(x, axis=-1, keepdims=True)
    var = jnp.mean((x - mean) ** 2, axis=-1, keepdims=True)
    return (x - mean) * jax.lax.rsqrt(var + EPS) * gamma + beta


def isab_kernel(x_ref, qt_ref, wk_ref, wv_ref, w1_ref, w2_ref, vec_ref, o_ref,
                *, seq_len):
    bt_s, D = x_ref.shape            # x block is (bt*S, D), already flattened
    S = seq_len
    bt = bt_s // S
    M = qt_ref.shape[1]

    # Packed per-channel vectors (f32): rows 0..6 are D-wide, row 7 is b1 (H-wide).
    vecs = vec_ref[...]
    bk, bv = vecs[0:1, :D], vecs[1:2, :D]
    g1, be1 = vecs[2:3, :D], vecs[3:4, :D]
    g2, be2 = vecs[4:5, :D], vecs[5:6, :D]
    b2 = vecs[6:7, :D]
    b1 = vecs[7:8, :]

    # --- K/V projections: bf16 x bf16 operands, f32 accumulation, bt*S rows.
    # Cast back to bf16 immediately so the largest live intermediates (k, v)
    # stay half-width in VMEM/vregs.
    x2 = x_ref[...]                                               # (bt*S, D) bf16
    k2 = (jnp.dot(x2, wk_ref[...], preferred_element_type=jnp.float32)
          + bk).astype(COMPUTE_DTYPE)                             # (bt*S, D)
    v2 = (jnp.dot(x2, wv_ref[...], preferred_element_type=jnp.float32)
          + bv).astype(COMPUTE_DTYPE)                             # (bt*S, D)

    # --- attention scores as ONE 2D matmul: (bt*S, D) x (D, M) -> (bt*S, M).
    # Query is shared across the batch and passed pre-transposed, so no Q
    # broadcast and no per-batch small matmuls.
    scores = jnp.dot(k2, qt_ref[...], preferred_element_type=jnp.float32)
    scores = scores.reshape(bt, S, M) * (1.0 / (D ** 0.5))

    # softmax over the S axis (axis=1) for every (batch, induced point)
    scores = scores - jnp.max(scores, axis=1, keepdims=True)
    p = jnp.exp(scores)
    inv = pl.reciprocal(jnp.sum(p, axis=1, keepdims=True), approx=True)
    attn = jnp.swapaxes(p * inv, 1, 2).astype(COMPUTE_DTYPE)      # (bt, M, S)

    v3 = v2.reshape(bt, S, D)
    head = jnp.einsum("bms,bsd->bmd", attn, v3,
                      preferred_element_type=jnp.float32)
    head = head.reshape(bt * M, D)

    # --- residual block: LN1 -> Linear/ReLU/Linear -> add -> LN2 (f32) ---
    res = _layer_norm(head, g1, be1)
    h = jnp.dot(res.astype(COMPUTE_DTYPE), w1_ref[...],
                preferred_element_type=jnp.float32) + b1
    h = jnp.maximum(h, 0.0)
    dnn = jnp.dot(h.astype(COMPUTE_DTYPE), w2_ref[...],
                  preferred_element_type=jnp.float32) + b2
    res2 = _layer_norm(res + dnn, g2, be2)

    # TODO(synk): for D < 128 a wrapper-side lane-dense (B, M*D) output layout
    # would remove the masked partial stores; kept (bt*M, D) to avoid an
    # in-kernel cross-lane reshape.
    # TODO(synk): for large S, restructure as an online-softmax loop over S
    # chunks (running m/l/acc) so VMEM is O(bt*(M*D + S_chunk*D)).
    # TODO(synk): at production D on v7x, tile the 4D MLP hidden dim (stream
    # W1/W2 H-slices) instead of holding both weights resident in VMEM.
    o_ref[...] = res2.astype(o_ref.dtype)


def _device_profile():
    """Per-chip tiling/VMEM budget. v7x: 64 MiB VMEM, 2 TCs; v5e/v6e: 128 MiB, 1 TC."""
    kind = ""
    try:
        kind = jax.devices()[0].device_kind.lower()
    except Exception:
        pass
    if "v7" in kind:
        return {"vmem_limit": 40 * 1024 * 1024, "min_rows": 256,
                "max_rows": 1024, "multi_step": True}
    if "v6" in kind:
        return {"vmem_limit": 64 * 1024 * 1024, "min_rows": 256,
                "max_rows": 4096, "multi_step": False}
    return {"vmem_limit": 64 * 1024 * 1024, "min_rows": 128,
            "max_rows": 4096, "multi_step": False}


def _pick_block_batch(B, S, M, *, min_rows, max_rows, prefer_multi_step):
    """Pick bt (batch elements per grid step).

    Constraints: bt divides B; unless the block is the full array, (bt*S) must
    be a multiple of 16 (bf16 input sublane tiling) and (bt*M) a multiple of 8
    (f32 output sublane tiling). Prefers: bt*S >= min_rows (MXU-saturating),
    >=2 grid steps on 2-TC chips, then the largest tile <= max_rows.
    """
    divisors = [d for d in range(1, B + 1) if B % d == 0]

    def aligned(d):
        return d == B or ((d * S) % 16 == 0 and (d * M) % 8 == 0)

    cands = [d for d in divisors if aligned(d)] or [B]
    fitting = [d for d in cands if d * S <= max_rows] or cands

    def key(d):
        return (d * S >= min_rows,
                (d < B) if prefer_multi_step else True,
                d * S)

    return max(fitting, key=key)


def _pack_vectors(p, D, H):
    """Pack the 8 tiny per-channel vectors into one (8, H) f32 operand."""
    vec = jnp.zeros((8, H), jnp.float32)
    vec = vec.at[0, :D].set(p["bk"])
    vec = vec.at[1, :D].set(p["bv"])
    vec = vec.at[2, :D].set(p["ln1_g"])
    vec = vec.at[3, :D].set(p["ln1_b"])
    vec = vec.at[4, :D].set(p["ln2_g"])
    vec = vec.at[5, :D].set(p["ln2_b"])
    vec = vec.at[6, :D].set(p["b2"])
    vec = vec.at[7, :].set(p["b1"])
    return vec


def induced_set_attention(x, params):
    """x: (B, S, D) float32. Returns (B, M, D) float32."""
    B, S, D = x.shape
    M = params["query"].shape[0]
    H = params["w1"].shape[1]          # 4*D

    prof = _device_profile()
    # Crude per-row VMEM cap (bf16 x double-buffered + bf16 k + v), so large D
    # shrinks the tile before it shrinks us at compile time.
    row_bytes = 8 * D
    max_rows = min(prof["max_rows"],
                   max(prof["min_rows"], (prof["vmem_limit"] // 4) // max(row_bytes, 1)))
    bt = _pick_block_batch(B, S, M,
                           min_rows=prof["min_rows"], max_rows=max_rows,
                           prefer_multi_step=prof["multi_step"])
    grid = (B // bt,)

    # bf16 operands at the pallas_call boundary; weights are stored input-major
    # on the host (wk/wv: (D,D), w1: (D,H), w2: (H,D)); query is pre-transposed
    # to (D, M) so the kernel needs no .T / broadcast.
    xc = x.astype(COMPUTE_DTYPE).reshape(B * S, D)
    qt = params["query"].astype(COMPUTE_DTYPE).T          # (D, M)
    wk = params["wk"].astype(COMPUTE_DTYPE)
    wv = params["wv"].astype(COMPUTE_DTYPE)
    w1 = params["w1"].astype(COMPUTE_DTYPE)
    w2 = params["w2"].astype(COMPUTE_DTYPE)
    vec = _pack_vectors(params, D, H)

    # Advisory cost estimate for XLA's scheduler.
    flops = (4 * B * S * D * D          # K and V projections
             + 4 * B * M * S * D        # scores + attention-weighted sum
             + 4 * B * M * D * H)       # two MLP matmuls
    transcendentals = B * M * S + 3 * B * M
    bytes_accessed = (2 * B * S * D
                      + 2 * (2 * D * D + 2 * D * H + M * D)
                      + 4 * 8 * H
                      + 4 * B * M * D)
    cost = pl.CostEstimate(flops=flops, transcendentals=transcendentals,
                           bytes_accessed=bytes_accessed)

    def build_specs(single_buffer_consts):
        def const_spec(shape):
            n = len(shape)
            idx = (lambda b, n=n: (0,) * n)
            if single_buffer_consts:
                # constant-index blocks: no point double-buffering them
                return pl.BlockSpec(shape, idx, pipeline_mode=pl.Buffered(1))
            return pl.BlockSpec(shape, idx)

        in_specs = [
            pl.BlockSpec((bt * S, D), lambda b: (b, 0)),   # x, bt batch rows/step
            const_spec((D, M)),                            # induced query (transposed)
            const_spec((D, D)), const_spec((D, D)),        # Wk, Wv (input-major)
            const_spec((D, H)), const_spec((H, D)),        # W1, W2 (input-major)
            const_spec((8, H)),                            # packed biases / LN affine
        ]
        out_spec = pl.BlockSpec((bt * M, D), lambda b: (b, 0))
        return in_specs, out_spec

    attempts = [True, False] if hasattr(pl, "Buffered") else [False]
    for i, single_buffer in enumerate(attempts):
        try:
            in_specs, out_spec = build_specs(single_buffer)
            out = pl.pallas_call(
                functools.partial(isab_kernel, seq_len=S),
                out_shape=jax.ShapeDtypeStruct((B * M, D), jnp.float32),
                grid_spec=pltpu.PrefetchScalarGridSpec(
                    num_scalar_prefetch=0,
                    grid=grid,
                    in_specs=in_specs,
                    out_specs=out_spec,
                ),
                compiler_params=pltpu.CompilerParams(
                    dimension_semantics=("parallel",),
                    vmem_limit_bytes=prof["vmem_limit"]),
                cost_estimate=cost,
            )(xc, qt, wk, wv, w1, w2, vec)
            return out.reshape(B, M, D)
        except Exception:
            if i == len(attempts) - 1:
                raise
            # fall back to default (double-buffered) constant specs
            continue


def init_params(key, feature_dim, induced_dim):
    D, M, H = feature_dim, induced_dim, 4 * feature_dim
    ks = jax.random.split(key, 8)
    return {
        # nn.Parameter query: normal(mean=0, std=0.01)
        "query": 0.01 * jax.random.normal(ks[0], (M, D), jnp.float32),
        # QKVTransformV2(2, D, D): two linear projections (stored input-major)
        "wk": 0.05 * jax.random.normal(ks[1], (D, D), jnp.float32),
        "bk": 0.01 * jax.random.normal(ks[2], (D,), jnp.float32),
        "wv": 0.05 * jax.random.normal(ks[3], (D, D), jnp.float32),
        "bv": 0.01 * jax.random.normal(ks[4], (D,), jnp.float32),
        # LayerNorm affine params (PyTorch default: gamma=1, beta=0)
        "ln1_g": jnp.ones((D,), jnp.float32),
        "ln1_b": jnp.zeros((D,), jnp.float32),
        "ln2_g": jnp.ones((D,), jnp.float32),
        "ln2_b": jnp.zeros((D,), jnp.float32),
        # LinearTransform([D, 4D, D], True): Linear -> ReLU -> Linear (input-major)
        "w1": 0.05 * jax.random.normal(ks[5], (D, H), jnp.float32),
        "b1": jnp.zeros((H,), jnp.float32),
        "w2": 0.05 * jax.random.normal(ks[6], (H, D), jnp.float32),
        "b2": jnp.zeros((D,), jnp.float32),
    }


def reference(x, p):
    """Pure-JAX f32 reference for sanity check (weights stored input-major)."""
    k = jnp.einsum("bsd,de->bse", x, p["wk"]) + p["bk"]
    v = jnp.einsum("bsd,de->bse", x, p["wv"]) + p["bv"]
    d = x.shape[-1]
    s = jnp.einsum("md,bsd->bms", p["query"], k) / jnp.sqrt(jnp.float32(d))
    a = jax.nn.softmax(s, axis=-1)
    head = jnp.einsum("bms,bsd->bmd", a, v)

    def ln(y, g, b):
        mu = jnp.mean(y, -1, keepdims=True)
        va = jnp.mean((y - mu) ** 2, -1, keepdims=True)
        return (y - mu) / jnp.sqrt(va + EPS) * g + b

    res = ln(head, p["ln1_g"], p["ln1_b"])
    h = jnp.maximum(jnp.einsum("bmd,dh->bmh", res, p["w1"]) + p["b1"], 0.0)
    dnn = jnp.einsum("bmh,hd->bmd", h, p["w2"]) + p["b2"]
    return ln(res + dnn, p["ln2_g"], p["ln2_b"])


if __name__ == "__main__":
    B, S, D, M = 2, 8, 32, 8           # batch, seq, featureDim, inducedDim
    key = jax.random.PRNGKey(0)
    kx, kp = jax.random.split(key)
    x = jax.random.normal(kx, (B, S, D), jnp.float32)
    params = init_params(kp, D, M)

    out = induced_set_attention(x, params)
    out = jax.block_until_ready(out)
    assert out.shape == (B, M, D)

    # Compare against an f32 reference computed on the SAME bf16-quantized
    # operands; the remaining difference comes from bf16 intermediate casts and
    # the approximate (EUP) softmax reciprocal.
    quant = lambda a: a.astype(COMPUTE_DTYPE).astype(jnp.float32)
    p_ref = dict(params)
    for name in ("query", "wk", "wv", "w1", "w2"):
        p_ref[name] = quant(params[name])
    ref = reference(quant(x), p_ref)
    err = float(jnp.max(jnp.abs(out - ref)))
    assert err < 3e-2, f"mismatch vs reference: {err}"

    print("KERNEL_OK")
</pallas_src>

<mosaic_0001>
module attributes {stable_mosaic.version = 11 : i64} {
  func.func @isab_kernel(%arg0: i32, %arg1: memref<16x32xbf16, #tpu.memory_space<vmem>>, %arg2: memref<32x8xbf16, #tpu.memory_space<vmem>>, %arg3: memref<32x32xbf16, #tpu.memory_space<vmem>>, %arg4: memref<32x32xbf16, #tpu.memory_space<vmem>>, %arg5: memref<32x128xbf16, #tpu.memory_space<vmem>>, %arg6: memref<128x32xbf16, #tpu.memory_space<vmem>>, %arg7: memref<8x128xf32, #tpu.memory_space<vmem>>, %arg8: memref<16x32xf32, #tpu.memory_space<vmem>>) attributes {dimension_semantics = [#tpu.dimension_semantics<parallel>], iteration_bounds = array<i64: 1>, scalar_prefetch = 0 : i64, scratch_operands = 0 : i64, tpu.core_type = #tpu.core_type<tc>, window_params = [{transform_indices = @transform_0, window_bounds = array<i64: 16, 32>}, {pipeline_mode = #tpu.pipeline_mode<synchronous>, transform_indices = @transform_1, window_bounds = array<i64: 32, 8>}, {pipeline_mode = #tpu.pipeline_mode<synchronous>, transform_indices = @transform_2, window_bounds = array<i64: 32, 32>}, {pipeline_mode = #tpu.pipeline_mode<synchronous>, transform_indices = @transform_3, window_bounds = array<i64: 32, 32>}, {pipeline_mode = #tpu.pipeline_mode<synchronous>, transform_indices = @transform_4, window_bounds = array<i64: 32, 128>}, {pipeline_mode = #tpu.pipeline_mode<synchronous>, transform_indices = @transform_5, window_bounds = array<i64: 128, 32>}, {pipeline_mode = #tpu.pipeline_mode<synchronous>, transform_indices = @transform_6, window_bounds = array<i64: 8, 128>}, {transform_indices = @transform_7, window_bounds = array<i64: 16, 32>}]} {
    %c0 = arith.constant 0 : index
    %c0_0 = arith.constant 0 : index
    %0 = vector.load %arg7[%c0, %c0_0] : memref<8x128xf32, #tpu.memory_space<vmem>>, vector<8x128xf32>
    %1 = vector.extract_strided_slice %0 {offsets = [0, 0], sizes = [1, 32], strides = [1, 1]} : vector<8x128xf32> to vector<1x32xf32>
    %2 = vector.extract_strided_slice %0 {offsets = [1, 0], sizes = [1, 32], strides = [1, 1]} : vector<8x128xf32> to vector<1x32xf32>
    %3 = vector.extract_strided_slice %0 {offsets = [2, 0], sizes = [1, 32], strides = [1, 1]} : vector<8x128xf32> to vector<1x32xf32>
    %4 = vector.extract_strided_slice %0 {offsets = [3, 0], sizes = [1, 32], strides = [1, 1]} : vector<8x128xf32> to vector<1x32xf32>
    %5 = vector.extract_strided_slice %0 {offsets = [4, 0], sizes = [1, 32], strides = [1, 1]} : vector<8x128xf32> to vector<1x32xf32>
    %6 = vector.extract_strided_slice %0 {offsets = [5, 0], sizes = [1, 32], strides = [1, 1]} : vector<8x128xf32> to vector<1x32xf32>
    %7 = vector.extract_strided_slice %0 {offsets = [6, 0], sizes = [1, 32], strides = [1, 1]} : vector<8x128xf32> to vector<1x32xf32>
    %8 = vector.extract_strided_slice %0 {offsets = [7, 0], sizes = [1, 128], strides = [1, 1]} : vector<8x128xf32> to vector<1x128xf32>
    %c0_1 = arith.constant 0 : index
    %c0_2 = arith.constant 0 : index
    %9 = vector.load %arg1[%c0_1, %c0_2] : memref<16x32xbf16, #tpu.memory_space<vmem>>, vector<16x32xbf16>
    %c0_3 = arith.constant 0 : index
    %c0_4 = arith.constant 0 : index
    %10 = vector.load %arg3[%c0_3, %c0_4] : memref<32x32xbf16, #tpu.memory_space<vmem>>, vector<32x32xbf16>
    %cst = arith.constant dense<0.000000e+00> : vector<16x32xf32>
    %11 = tpu.matmul %9, %10, %cst {dimension_numbers = #tpu.dot_dimension_numbers<[1], [0], [0], [1], [0, 0, 1, 1], [], []>} : vector<16x32xbf16>, vector<32x32xbf16>, vector<16x32xf32> -> vector<16x32xf32>
    %12 = vector.broadcast %1 : vector<1x32xf32> to vector<16x32xf32>
    %13 = arith.addf %11, %12 : vector<16x32xf32>
    %14 = arith.truncf %13 : vector<16x32xf32> to vector<16x32xbf16>
    %c0_5 = arith.constant 0 : index
    %c0_6 = arith.constant 0 : index
    %15 = vector.load %arg4[%c0_5, %c0_6] : memref<32x32xbf16, #tpu.memory_space<vmem>>, vector<32x32xbf16>
    %cst_7 = arith.constant dense<0.000000e+00> : vector<16x32xf32>
    %16 = tpu.matmul %9, %15, %cst_7 {dimension_numbers = #tpu.dot_dimension_numbers<[1], [0], [0], [1], [0, 0, 1, 1], [], []>} : vector<16x32xbf16>, vector<32x32xbf16>, vector<16x32xf32> -> vector<16x32xf32>
    %17 = vector.broadcast %2 : vector<1x32xf32> to vector<16x32xf32>
    %18 = arith.addf %16, %17 : vector<16x32xf32>
    %19 = arith.truncf %18 : vector<16x32xf32> to vector<16x32xbf16>
    %c0_8 = arith.constant 0 : index
    %c0_9 = arith.constant 0 : index
    %20 = vector.load %arg2[%c0_8, %c0_9] : memref<32x8xbf16, #tpu.memory_space<vmem>>, vector<32x8xbf16>
    %cst_10 = arith.constant dense<0.000000e+00> : vector<16x8xf32>
    %21 = tpu.matmul %14, %20, %cst_10 {dimension_numbers = #tpu.dot_dimension_numbers<[1], [0], [0], [1], [0, 0, 1, 1], [], []>} : vector<16x32xbf16>, vector<32x8xbf16>, vector<16x8xf32> -> vector<16x8xf32>
    %22 = vector.shape_cast %21 : vector<16x8xf32> to vector<2x8x8xf32>
    %cst_11 = arith.constant 0.176776692 : f32
    %23 = vector.broadcast %cst_11 : f32 to vector<2x8x8xf32>
    %24 = arith.mulf %22, %23 : vector<2x8x8xf32>
    %cst_12 = arith.constant dense<0xFF800000> : vector<2x8xf32>
    %25 = vector.multi_reduction <maximumf>, %24, %cst_12 [1] : vector<2x8x8xf32> to vector<2x8xf32>
    %26 = vector.shape_cast %25 : vector<2x8xf32> to vector<2x1x8xf32>
    %27 = vector.broadcast %26 : vector<2x1x8xf32> to vector<2x8x8xf32>
    %28 = arith.subf %24, %27 : vector<2x8x8xf32>
    %29 = math.exp %28 : vector<2x8x8xf32>
    %cst_13 = arith.constant dense<0.000000e+00> : vector<2x8xf32>
    %30 = vector.multi_reduction <add>, %29, %cst_13 [1] : vector<2x8x8xf32> to vector<2x8xf32>
    %31 = vector.shape_cast %30 : vector<2x8xf32> to vector<2x1x8xf32>
    %32 = tpu.reciprocal %31 {approx = true} : vector<2x1x8xf32> -> vector<2x1x8xf32>
    %33 = vector.broadcast %32 : vector<2x1x8xf32> to vector<2x8x8xf32>
    %34 = arith.mulf %29, %33 : vector<2x8x8xf32>
    %35 = tpu.transpose %34, [0, 2, 1] : vector<2x8x8xf32> -> vector<2x8x8xf32>
    %36 = arith.truncf %35 : vector<2x8x8xf32> to vector<2x8x8xbf16>
    %37 = vector.shape_cast %19 : vector<16x32xbf16> to vector<2x8x32xbf16>
    "tpu.trace_start"() <{level = 10 : i32, message = "bms,bsd->bmd"}> : () -> ()
    %cst_14 = arith.constant dense<0.000000e+00> : vector<2x8x32xf32>
    %38 = tpu.matmul %36, %37, %cst_14 {dimension_numbers = #tpu.dot_dimension_numbers<[2], [1], [1], [2], [0, 0, 0, 1, 1, 2], [0], [0]>} : vector<2x8x8xbf16>, vector<2x8x32xbf16>, vector<2x8x32xf32> -> vector<2x8x32xf32>
    "tpu.trace_stop"() : () -> ()
    %39 = vector.shape_cast %38 : vector<2x8x32xf32> to vector<16x32xf32>
    %cst_15 = arith.constant dense<0.000000e+00> : vector<16xf32>
    %40 = vector.multi_reduction <add>, %39, %cst_15 [1] : vector<16x32xf32> to vector<16xf32>
    %41 = vector.shape_cast %40 : vector<16xf32> to vector<16x1xf32>
    %cst_16 = arith.constant 3.200000e+01 : f32
    %42 = vector.broadcast %cst_16 : f32 to vector<16x1xf32>
    %43 = arith.divf %41, %42 : vector<16x1xf32>
    %44 = vector.broadcast %43 : vector<16x1xf32> to vector<16x32xf32>
    %45 = arith.subf %39, %44 : vector<16x32xf32>
    %46 = arith.mulf %45, %45 : vector<16x32xf32>
    %cst_17 = arith.constant dense<0.000000e+00> : vector<16xf32>
    %47 = vector.multi_reduction <add>, %46, %cst_17 [1] : vector<16x32xf32> to vector<16xf32>
    %48 = vector.shape_cast %47 : vector<16xf32> to vector<16x1xf32>
    %cst_18 = arith.constant 3.200000e+01 : f32
    %49 = vector.broadcast %cst_18 : f32 to vector<16x1xf32>
    %50 = arith.divf %48, %49 : vector<16x1xf32>
    %51 = vector.broadcast %43 : vector<16x1xf32> to vector<16x32xf32>
    %52 = arith.subf %39, %51 : vector<16x32xf32>
    %cst_19 = arith.constant 9.99999974E-6 : f32
    %53 = vector.broadcast %cst_19 : f32 to vector<16x1xf32>
    %54 = arith.addf %50, %53 : vector<16x1xf32>
    %55 = math.rsqrt %54 : vector<16x1xf32>
    %56 = vector.broadcast %55 : vector<16x1xf32> to vector<16x32xf32>
    %57 = arith.mulf %52, %56 : vector<16x32xf32>
    %58 = vector.broadcast %3 : vector<1x32xf32> to vector<16x32xf32>
    %59 = arith.mulf %57, %58 : vector<16x32xf32>
    %60 = vector.broadcast %4 : vector<1x32xf32> to vector<16x32xf32>
    %61 = arith.addf %59, %60 : vector<16x32xf32>
    %62 = arith.truncf %61 : vector<16x32xf32> to vector<16x32xbf16>
    %c0_20 = arith.constant 0 : index
    %c0_21 = arith.constant 0 : index
    %63 = vector.load %arg5[%c0_20, %c0_21] : memref<32x128xbf16, #tpu.memory_space<vmem>>, vector<32x128xbf16>
    %cst_22 = arith.constant dense<0.000000e+00> : vector<16x128xf32>
    %64 = tpu.matmul %62, %63, %cst_22 {dimension_numbers = #tpu.dot_dimension_numbers<[1], [0], [0], [1], [0, 0, 1, 1], [], []>} : vector<16x32xbf16>, vector<32x128xbf16>, vector<16x128xf32> -> vector<16x128xf32>
    %65 = vector.broadcast %8 : vector<1x128xf32> to vector<16x128xf32>
    %66 = arith.addf %64, %65 : vector<16x128xf32>
    %cst_23 = arith.constant 0.000000e+00 : f32
    %67 = vector.broadcast %cst_23 : f32 to vector<16x128xf32>
    %68 = arith.maximumf %66, %67 : vector<16x128xf32>
    %69 = arith.truncf %68 : vector<16x128xf32> to vector<16x128xbf16>
    %c0_24 = arith.constant 0 : index
    %c0_25 = arith.constant 0 : index
    %70 = vector.load %arg6[%c0_24, %c0_25] : memref<128x32xbf16, #tpu.memory_space<vmem>>, vector<128x32xbf16>
    %cst_26 = arith.constant dense<0.000000e+00> : vector<16x32xf32>
    %71 = tpu.matmul %69, %70, %cst_26 {dimension_numbers = #tpu.dot_dimension_numbers<[1], [0], [0], [1], [0, 0, 1, 1], [], []>} : vector<16x128xbf16>, vector<128x32xbf16>, vector<16x32xf32> -> vector<16x32xf32>
    %72 = vector.broadcast %7 : vector<1x32xf32> to vector<16x32xf32>
    %73 = arith.addf %71, %72 : vector<16x32xf32>
    %74 = arith.addf %61, %73 : vector<16x32xf32>
    %cst_27 = arith.constant dense<0.000000e+00> : vector<16xf32>
    %75 = vector.multi_reduction <add>, %74, %cst_27 [1] : vector<16x32xf32> to vector<16xf32>
    %76 = vector.shape_cast %75 : vector<16xf32> to vector<16x1xf32>
    %cst_28 = arith.constant 3.200000e+01 : f32
    %77 = vector.broadcast %cst_28 : f32 to vector<16x1xf32>
    %78 = arith.divf %76, %77 : vector<16x1xf32>
    %79 = vector.broadcast %78 : vector<16x1xf32> to vector<16x32xf32>
    %80 = arith.subf %74, %79 : vector<16x32xf32>
    %81 = arith.mulf %80, %80 : vector<16x32xf32>
    %cst_29 = arith.constant dense<0.000000e+00> : vector<16xf32>
    %82 = vector.multi_reduction <add>, %81, %cst_29 [1] : vector<16x32xf32> to vector<16xf32>
    %83 = vector.shape_cast %82 : vector<16xf32> to vector<16x1xf32>
    %cst_30 = arith.constant 3.200000e+01 : f32
    %84 = vector.broadcast %cst_30 : f32 to vector<16x1xf32>
    %85 = arith.divf %83, %84 : vector<16x1xf32>
    %86 = vector.broadcast %78 : vector<16x1xf32> to vector<16x32xf32>
    %87 = arith.subf %74, %86 : vector<16x32xf32>
    %cst_31 = arith.constant 9.99999974E-6 : f32
    %88 = vector.broadcast %cst_31 : f32 to vector<16x1xf32>
    %89 = arith.addf %85, %88 : vector<16x1xf32>
    %90 = math.rsqrt %89 : vector<16x1xf32>
    %91 = vector.broadcast %90 : vector<16x1xf32> to vector<16x32xf32>
    %92 = arith.mulf %87, %91 : vector<16x32xf32>
    %93 = vector.broadcast %5 : vector<1x32xf32> to vector<16x32xf32>
    %94 = arith.mulf %92, %93 : vector<16x32xf32>
    %95 = vector.broadcast %6 : vector<1x32xf32> to vector<16x32xf32>
    %96 = arith.addf %94, %95 : vector<16x32xf32>
    %c0_32 = arith.constant 0 : index
    %c0_33 = arith.constant 0 : index
    %97 = vector.load %arg8[%c0_32, %c0_33] : memref<16x32xf32, #tpu.memory_space<vmem>>, vector<16x32xf32>
    tpu.vector_store %arg8[%c0_32, %c0_33], %96 {strides = array<i32>} : memref<16x32xf32, #tpu.memory_space<vmem>>, vector<16x32xf32>,
    return
  }
  func.func @transform_0(%arg0: i32) -> (i32, i32) {
    %c0_i32 = arith.constant 0 : i32
    %c0_i32_0 = arith.constant 0 : i32
    return %arg0, %c0_i32 : i32, i32
  }
  func.func @transform_1(%arg0: i32) -> (i32, i32) {
    %c0_i32 = arith.constant 0 : i32
    %c0_i32_0 = arith.constant 0 : i32
    %c0_i32_1 = arith.constant 0 : i32
    return %c0_i32, %c0_i32_0 : i32, i32
  }
  func.func @transform_2(%arg0: i32) -> (i32, i32) {
    %c0_i32 = arith.constant 0 : i32
    %c0_i32_0 = arith.constant 0 : i32
    %c0_i32_1 = arith.constant 0 : i32
    return %c0_i32, %c0_i32_0 : i32, i32
  }
  func.func @transform_3(%arg0: i32) -> (i32, i32) {
    %c0_i32 = arith.constant 0 : i32
    %c0_i32_0 = arith.constant 0 : i32
    %c0_i32_1 = arith.constant 0 : i32
    return %c0_i32, %c0_i32_0 : i32, i32
  }
  func.func @transform_4(%arg0: i32) -> (i32, i32) {
    %c0_i32 = arith.constant 0 : i32
    %c0_i32_0 = arith.constant 0 : i32
    %c0_i32_1 = arith.constant 0 : i32
    return %c0_i32, %c0_i32_0 : i32, i32
  }
  func.func @transform_5(%arg0: i32) -> (i32, i32) {
    %c0_i32 = arith.constant 0 : i32
    %c0_i32_0 = arith.constant 0 : i32
    %c0_i32_1 = arith.constant 0 : i32
    return %c0_i32, %c0_i32_0 : i32, i32
  }
  func.func @transform_6(%arg0: i32) -> (i32, i32) {
    %c0_i32 = arith.constant 0 : i32
    %c0_i32_0 = arith.constant 0 : i32
    %c0_i32_1 = arith.constant 0 : i32
    return %c0_i32, %c0_i32_0 : i32, i32
  }
  func.func @transform_7(%arg0: i32) -> (i32, i32) {
    %c0_i32 = arith.constant 0 : i32
    %c0_i32_0 = arith.constant 0 : i32
    return %arg0, %c0_i32 : i32, i32
  }
}

module attributes {stable_mosaic.version = 11 : i64} {
  func.func @isab_kernel(%arg0: i32, %arg1: memref<16x32xbf16, #tpu.memory_space<vmem>>, %arg2: memref<32x8xbf16, #tpu.memory_space<vmem>>, %arg3: memref<32x32xbf16, #tpu.memory_space<vmem>>, %arg4: memref<32x32xbf16, #tpu.memory_space<vmem>>, %arg5: memref<32x128xbf16, #tpu.memory_space<vmem>>, %arg6: memref<128x32xbf16, #tpu.memory_space<vmem>>, %arg7: memref<8x128xf32, #tpu.memory_space<vmem>>, %arg8: memref<16x32xf32, #tpu.memory_space<vmem>>) attributes {dimension_semantics = [#tpu.dimension_semantics<parallel>], iteration_bounds = array<i64: 1>, scalar_prefetch = 0 : i64, scratch_operands = 0 : i64, tpu.core_type = #tpu.core_type<tc>, window_params = [{transform_indices = @transform_0, window_bounds = array<i64: 16, 32>}, {pipeline_mode = #tpu.pipeline_mode<synchronous>, transform_indices = @transform_1, window_bounds = array<i64: 32, 8>}, {pipeline_mode = #tpu.pipeline_mode<synchronous>, transform_indices = @transform_2, window_bounds = array<i64: 32, 32>}, {pipeline_mode = #tpu.pipeline_mode<synchronous>, transform_indices = @transform_3, window_bounds = array<i64: 32, 32>}, {pipeline_mode = #tpu.pipeline_mode<synchronous>, transform_indices = @transform_4, window_bounds = array<i64: 32, 128>}, {pipeline_mode = #tpu.pipeline_mode<synchronous>, transform_indices = @transform_5, window_bounds = array<i64: 128, 32>}, {pipeline_mode = #tpu.pipeline_mode<synchronous>, transform_indices = @transform_6, window_bounds = array<i64: 8, 128>}, {transform_indices = @transform_7, window_bounds = array<i64: 16, 32>}]} {
    %c0 = arith.constant 0 : index
    %c0_0 = arith.constant 0 : index
    %0 = vector.load %arg7[%c0, %c0_0] : memref<8x128xf32, #tpu.memory_space<vmem>>, vector<8x128xf32>
    %1 = vector.extract_strided_slice %0 {offsets = [0, 0], sizes = [1, 32], strides = [1, 1]} : vector<8x128xf32> to vector<1x32xf32>
    %2 = vector.extract_strided_slice %0 {offsets = [1, 0], sizes = [1, 32], strides = [1, 1]} : vector<8x128xf32> to vector<1x32xf32>
    %3 = vector.extract_strided_slice %0 {offsets = [2, 0], sizes = [1, 32], strides = [1, 1]} : vector<8x128xf32> to vector<1x32xf32>
    %4 = vector.extract_strided_slice %0 {offsets = [3, 0], sizes = [1, 32], strides = [1, 1]} : vector<8x128xf32> to vector<1x32xf32>
    %5 = vector.extract_strided_slice %0 {offsets = [4, 0], sizes = [1, 32], strides = [1, 1]} : vector<8x128xf32> to vector<1x32xf32>
    %6 = vector.extract_strided_slice %0 {offsets = [5, 0], sizes = [1, 32], strides = [1, 1]} : vector<8x128xf32> to vector<1x32xf32>
    %7 = vector.extract_strided_slice %0 {offsets = [6, 0], sizes = [1, 32], strides = [1, 1]} : vector<8x128xf32> to vector<1x32xf32>
    %8 = vector.extract_strided_slice %0 {offsets = [7, 0], sizes = [1, 128], strides = [1, 1]} : vector<8x128xf32> to vector<1x128xf32>
    %c0_1 = arith.constant 0 : index
    %c0_2 = arith.constant 0 : index
    %9 = vector.load %arg1[%c0_1, %c0_2] : memref<16x32xbf16, #tpu.memory_space<vmem>>, vector<16x32xbf16>
    %c0_3 = arith.constant 0 : index
    %c0_4 = arith.constant 0 : index
    %10 = vector.load %arg3[%c0_3, %c0_4] : memref<32x32xbf16, #tpu.memory_space<vmem>>, vector<32x32xbf16>
    %cst = arith.constant dense<0.000000e+00> : vector<16x32xf32>
    %11 = tpu.matmul %9, %10, %cst {dimension_numbers = #tpu.dot_dimension_numbers<[1], [0], [0], [1], [0, 0, 1, 1], [], []>} : vector<16x32xbf16>, vector<32x32xbf16>, vector<16x32xf32> -> vector<16x32xf32>
    %12 = vector.broadcast %1 : vector<1x32xf32> to vector<16x32xf32>
    %13 = arith.addf %11, %12 : vector<16x32xf32>
    %14 = arith.truncf %13 : vector<16x32xf32> to vector<16x32xbf16>
    %c0_5 = arith.constant 0 : index
    %c0_6 = arith.constant 0 : index
    %15 = vector.load %arg4[%c0_5, %c0_6] : memref<32x32xbf16, #tpu.memory_space<vmem>>, vector<32x32xbf16>
    %cst_7 = arith.constant dense<0.000000e+00> : vector<16x32xf32>
    %16 = tpu.matmul %9, %15, %cst_7 {dimension_numbers = #tpu.dot_dimension_numbers<[1], [0], [0], [1], [0, 0, 1, 1], [], []>} : vector<16x32xbf16>, vector<32x32xbf16>, vector<16x32xf32> -> vector<16x32xf32>
    %17 = vector.broadcast %2 : vector<1x32xf32> to vector<16x32xf32>
    %18 = arith.addf %16, %17 : vector<16x32xf32>
    %19 = arith.truncf %18 : vector<16x32xf32> to vector<16x32xbf16>
    %c0_8 = arith.constant 0 : index
    %c0_9 = arith.constant 0 : index
    %20 = vector.load %arg2[%c0_8, %c0_9] : memref<32x8xbf16, #tpu.memory_space<vmem>>, vector<32x8xbf16>
    %cst_10 = arith.constant dense<0.000000e+00> : vector<16x8xf32>
    %21 = tpu.matmul %14, %20, %cst_10 {dimension_numbers = #tpu.dot_dimension_numbers<[1], [0], [0], [1], [0, 0, 1, 1], [], []>} : vector<16x32xbf16>, vector<32x8xbf16>, vector<16x8xf32> -> vector<16x8xf32>
    %22 = vector.shape_cast %21 : vector<16x8xf32> to vector<2x8x8xf32>
    %cst_11 = arith.constant 0.176776692 : f32
    %23 = vector.broadcast %cst_11 : f32 to vector<2x8x8xf32>
    %24 = arith.mulf %22, %23 : vector<2x8x8xf32>
    %cst_12 = arith.constant dense<0xFF800000> : vector<2x8xf32>
    %25 = vector.multi_reduction <maximumf>, %24, %cst_12 [1] : vector<2x8x8xf32> to vector<2x8xf32>
    %26 = vector.shape_cast %25 : vector<2x8xf32> to vector<2x1x8xf32>
    %27 = vector.broadcast %26 : vector<2x1x8xf32> to vector<2x8x8xf32>
    %28 = arith.subf %24, %27 : vector<2x8x8xf32>
    %29 = math.exp %28 : vector<2x8x8xf32>
    %cst_13 = arith.constant dense<0.000000e+00> : vector<2x8xf32>
    %30 = vector.multi_reduction <add>, %29, %cst_13 [1] : vector<2x8x8xf32> to vector<2x8xf32>
    %31 = vector.shape_cast %30 : vector<2x8xf32> to vector<2x1x8xf32>
    %32 = tpu.reciprocal %31 {approx = true} : vector<2x1x8xf32> -> vector<2x1x8xf32>
    %33 = vector.broadcast %32 : vector<2x1x8xf32> to vector<2x8x8xf32>
    %34 = arith.mulf %29, %33 : vector<2x8x8xf32>
    %35 = tpu.transpose %34, [0, 2, 1] : vector<2x8x8xf32> -> vector<2x8x8xf32>
    %36 = arith.truncf %35 : vector<2x8x8xf32> to vector<2x8x8xbf16>
    %37 = vector.shape_cast %19 : vector<16x32xbf16> to vector<2x8x32xbf16>
    "tpu.trace_start"() <{level = 10 : i32, message = "bms,bsd->bmd"}> : () -> ()
    %cst_14 = arith.constant dense<0.000000e+00> : vector<2x8x32xf32>
    %38 = tpu.matmul %36, %37, %cst_14 {dimension_numbers = #tpu.dot_dimension_numbers<[2], [1], [1], [2], [0, 0, 0, 1, 1, 2], [0], [0]>} : vector<2x8x8xbf16>, vector<2x8x32xbf16>, vector<2x8x32xf32> -> vector<2x8x32xf32>
    "tpu.trace_stop"() : () -> ()
    %39 = vector.shape_cast %38 : vector<2x8x32xf32> to vector<16x32xf32>
    %cst_15 = arith.constant dense<0.000000e+00> : vector<16xf32>
    %40 = vector.multi_reduction <add>, %39, %cst_15 [1] : vector<16x32xf32> to vector<16xf32>
    %41 = vector.shape_cast %40 : vector<16xf32> to vector<16x1xf32>
    %cst_16 = arith.constant 3.200000e+01 : f32
    %42 = vector.broadcast %cst_16 : f32 to vector<16x1xf32>
    %43 = arith.divf %41, %42 : vector<16x1xf32>
    %44 = vector.broadcast %43 : vector<16x1xf32> to vector<16x32xf32>
    %45 = arith.subf %39, %44 : vector<16x32xf32>
    %46 = arith.mulf %45, %45 : vector<16x32xf32>
    %cst_17 = arith.constant dense<0.000000e+00> : vector<16xf32>
    %47 = vector.multi_reduction <add>, %46, %cst_17 [1] : vector<16x32xf32> to vector<16xf32>
    %48 = vector.shape_cast %47 : vector<16xf32> to vector<16x1xf32>
    %cst_18 = arith.constant 3.200000e+01 : f32
    %49 = vector.broadcast %cst_18 : f32 to vector<16x1xf32>
    %50 = arith.divf %48, %49 : vector<16x1xf32>
    %51 = vector.broadcast %43 : vector<16x1xf32> to vector<16x32xf32>
    %52 = arith.subf %39, %51 : vector<16x32xf32>
    %cst_19 = arith.constant 9.99999974E-6 : f32
    %53 = vector.broadcast %cst_19 : f32 to vector<16x1xf32>
    %54 = arith.addf %50, %53 : vector<16x1xf32>
    %55 = math.rsqrt %54 : vector<16x1xf32>
    %56 = vector.broadcast %55 : vector<16x1xf32> to vector<16x32xf32>
    %57 = arith.mulf %52, %56 : vector<16x32xf32>
    %58 = vector.broadcast %3 : vector<1x32xf32> to vector<16x32xf32>
    %59 = arith.mulf %57, %58 : vector<16x32xf32>
    %60 = vector.broadcast %4 : vector<1x32xf32> to vector<16x32xf32>
    %61 = arith.addf %59, %60 : vector<16x32xf32>
    %62 = arith.truncf %61 : vector<16x32xf32> to vector<16x32xbf16>
    %c0_20 = arith.constant 0 : index
    %c0_21 = arith.constant 0 : index
    %63 = vector.load %arg5[%c0_20, %c0_21] : memref<32x128xbf16, #tpu.memory_space<vmem>>, vector<32x128xbf16>
    %cst_22 = arith.constant dense<0.000000e+00> : vector<16x128xf32>
    %64 = tpu.matmul %62, %63, %cst_22 {dimension_numbers = #tpu.dot_dimension_numbers<[1], [0], [0], [1], [0, 0, 1, 1], [], []>} : vector<16x32xbf16>, vector<32x128xbf16>, vector<16x128xf32> -> vector<16x128xf32>
    %65 = vector.broadcast %8 : vector<1x128xf32> to vector<16x128xf32>
    %66 = arith.addf %64, %65 : vector<16x128xf32>
    %cst_23 = arith.constant 0.000000e+00 : f32
    %67 = vector.broadcast %cst_23 : f32 to vector<16x128xf32>
    %68 = arith.maximumf %66, %67 : vector<16x128xf32>
    %69 = arith.truncf %68 : vector<16x128xf32> to vector<16x128xbf16>
    %c0_24 = arith.constant 0 : index
    %c0_25 = arith.constant 0 : index
    %70 = vector.load %arg6[%c0_24, %c0_25] : memref<128x32xbf16, #tpu.memory_space<vmem>>, vector<128x32xbf16>
    %cst_26 = arith.constant dense<0.000000e+00> : vector<16x32xf32>
    %71 = tpu.matmul %69, %70, %cst_26 {dimension_numbers = #tpu.dot_dimension_numbers<[1], [0], [0], [1], [0, 0, 1, 1], [], []>} : vector<16x128xbf16>, vector<128x32xbf16>, vector<16x32xf32> -> vector<16x32xf32>
    %72 = vector.broadcast %7 : vector<1x32xf32> to vector<16x32xf32>
    %73 = arith.addf %71, %72 : vector<16x32xf32>
    %74 = arith.addf %61, %73 : vector<16x32xf32>
    %cst_27 = arith.constant dense<0.000000e+00> : vector<16xf32>
    %75 = vector.multi_reduction <add>, %74, %cst_27 [1] : vector<16x32xf32> to vector<16xf32>
    %76 = vector.shape_cast %75 : vector<16xf32> to vector<16x1xf32>
    %cst_28 = arith.constant 3.200000e+01 : f32
    %77 = vector.broadcast %cst_28 : f32 to vector<16x1xf32>
    %78 = arith.divf %76, %77 : vector<16x1xf32>
    %79 = vector.broadcast %78 : vector<16x1xf32> to vector<16x32xf32>
    %80 = arith.subf %74, %79 : vector<16x32xf32>
    %81 = arith.mulf %80, %80 : vector<16x32xf32>
    %cst_29 = arith.constant dense<0.000000e+00> : vector<16xf32>
    %82 = vector.multi_reduction <add>, %81, %cst_29 [1] : vector<16x32xf32> to vector<16xf32>
    %83 = vector.shape_cast %82 : vector<16xf32> to vector<16x1xf32>
    %cst_30 = arith.constant 3.200000e+01 : f32
    %84 = vector.broadcast %cst_30 : f32 to vector<16x1xf32>
    %85 = arith.divf %83, %84 : vector<16x1xf32>
    %86 = vector.broadcast %78 : vector<16x1xf32> to vector<16x32xf32>
    %87 = arith.subf %74, %86 : vector<16x32xf32>
    %cst_31 = arith.constant 9.99999974E-6 : f32
    %88 = vector.broadcast %cst_31 : f32 to vector<16x1xf32>
    %89 = arith.addf %85, %88 : vector<16x1xf32>
    %90 = math.rsqrt %89 : vector<16x1xf32>
    %91 = vector.broadcast %90 : vector<16x1xf32> to vector<16x32xf32>
    %92 = arith.mulf %87, %91 : vector<16x32xf32>
    %93 = vector.broadcast %5 : vector<1x32xf32> to vector<16x32xf32>
    %94 = arith.mulf %92, %93 : vector<16x32xf32>
    %95 = vector.broadcast %6 : vector<1x32xf32> to vector<16x32xf32>
    %96 = arith.addf %94, %95 : vector<16x32xf32>
    %c0_32 = arith.constant 0 : index
    %c0_33 = arith.constant 0 : index
    %97 = vector.load %arg8[%c0_32, %c0_33] : memref<16x32xf32, #tpu.memory_space<vmem>>, vector<16x32xf32>
    tpu.vector_store %arg8[%c0_32, %c0_33], %96 {strides = array<i32>} : memref<16x32xf32, #tpu.memory_space<vmem>>, vector<16x32xf32>,
    return
  }
  func.func @transform_0(%arg0: i32) -> (i32, i32) {
    %c0_i32 = arith.constant 0 : i32
    %c0_i32_0 = arith.constant 0 : i32
    return %arg0, %c0_i32 : i32, i32
  }
  func.func @transform_1(%arg0: i32) -> (i32, i32) {
    %c0_i32 = arith.constant 0 : i32
    %c0_i32_0 = arith.constant 0 : i32
    %c0_i32_1 = arith.constant 0 : i32
    return %c0_i32, %c0_i32_0 : i32, i32
  }
  func.func @transform_2(%arg0: i32) -> (i32, i32) {
    %c0_i32 = arith.constant 0 : i32
    %c0_i32_0 = arith.constant 0 : i32
    %c0_i32_1 = arith.constant 0 : i32
    return %c0_i32, %c0_i32_0 : i32, i32
  }
  func.func @transform_3(%arg0: i32) -> (i32, i32) {
    %c0_i32 = arith.constant 0 : i32
    %c0_i32_0 = arith.constant 0 : i32
    %c0_i32_1 = arith.constant 0 : i32
    return %c0_i32, %c0_i32_0 : i32, i32
  }
  func.func @transform_4(%arg0: i32) -> (i32, i32) {
    %c0_i32 = arith.constant 0 : i32
    %c0_i32_0 = arith.constant 0 : i32
    %c0_i32_1 = arith.constant 0 : i32
    return %c0_i32, %c0_i32_0 : i32, i32
  }
  func.func @transform_5(%arg0: i32) -> (i32, i32) {
    %c0_i32 = arith.constant 0 : i32
    %c0_i32_0 = arith.constant 0 : i32
    %c0_i32_1 = arith.constant 0 : i32
    return %c0_i32, %c0_i32_0 : i32, i32
  }
  func.func @transform_6(%arg0: i32) -> (i32, i32) {
    %c0_i32 = arith.constant 0 : i32
    %c0_i32_0 = arith.constant 0 : i32
    %c0_i32_1 = arith.constant 0 : i32
    return %c0_i32, %c0_i32_0 : i32, i32
  }
  func.func @transform_7(%arg0: i32) -> (i32, i32) {
    %c0_i32 = arith.constant 0 : i32
    %c0_i32_0 = arith.constant 0 : i32
    return %arg0, %c0_i32 : i32, i32
  }
}

</mosaic_0001>

<bundles_post_ra>
// kernel: tpu_custom_call.1
= control target key start
LH: loop header
LB: loop body
LE: loop exit
PB: predicated region body
PF: predicated region fallthrough
CT: control target
= control target key end

     0   :  { %s811_s0 = inlined_call_operand.vmem [shape: bf16[16,32], index: 0, kind: input, shape index: {}]   ;;  %s812_s1 = inlined_call_operand.vmem [shape: bf16[32,8], index: 1, kind: input, shape index: {}]   ;;  %s813_s2 = inlined_call_operand.vmem [shape: bf16[32,32], index: 2, kind: input, shape index: {}]   ;;  %s814_s3 = inlined_call_operand.vmem [shape: bf16[32,32], index: 3, kind: input, shape index: {}]   ;;  %s815_s4 = inlined_call_operand.vmem [shape: bf16[32,128], index: 4, kind: input, shape index: {}]   ;;  %s816_s5 = inlined_call_operand.vmem [shape: bf16[128,32], index: 5, kind: input, shape index: {}]   ;;  %s817_s6 = inlined_call_operand.vmem [shape: f32[8,128], index: 6, kind: input, shape index: {}]   ;;  %s818_s7 = inlined_call_operand.hbm [shape: f32[16,32], index: 7, kind: output, shape index: {}]  }
   0x1   :  { %v606_v0 = vld [vmem:[%s813_s2 + $0x8] sm:$0xff]  ;;  %v605_v2 = vld [vmem:[%s813_s2] sm:$0xff] }
   0x2   :  { %v608_v1 = vld [vmem:[%s814_s3 + $0x8] sm:$0xff]  ;;  %63 = vmatpush.bf16.msra.mxu0 %v606_v0 }
   0x3   :  { %12 = vsyncpa [#allocation3], 0  ;;  %95 = vmatpush.bf16.msra.mxu2 %v608_v1  ;;  %v607_v3 = vld [vmem:[%s814_s3] sm:$0xff]  ;;  %v610_v4 = vld [vmem:[%s812_s1 + $0x8] sm:$0xff]  ;;  %vm53_vm0 = vcmask 261120   ;;  %vm248_vm1 = vcmask 1043456  }
   0x4   :  { %v604_v5 = vld [vmem:[%s811_s0] sm:$0xff]  ;;  %vm140_vm2 = vcmask 64512   ;;  %s518_s11 = sshll.u32 %s818_s7, 4  ;;  %s672_s12 = smov 128   ;;  %s519_s11 = int_to_ptr.hbm [resolvable:$true] %s518_s11 }
   0x5   :  { %v609_v6 = vld [vmem:[%s812_s1] sm:$0xff]  ;;  %s673_s2 = smov 8  }
   0x6   :  { %64 = vmatpush.bf16.msra.mxu0 %v605_v2  ;;  %v740_v8 = vld [vmem:[%s817_s6] sm:$0xff] }
   0x7   :  { %96 = vmatpush.bf16.msra.mxu2 %v607_v3  ;;  %v76_v9 = vperm.slane %v740_v8, 1  ;;  %v35_v10 = vperm.slane %v740_v8, 0 }
   0x9   :  { %542 = vmatmul.msk.bf16.vlgmr.msra.gmra.mxu0 %vm53_vm0, %v604_v5 }
   0xa   :  { %551 = vmatmul.msk.bf16.vlgmr.msra.gmra.mxu2 %vm53_vm0, %v604_v5 }
   0xb   :  { %130 = vmatpush.bf16.msrb.mxu2 %v610_v4 }
   0xf   :  { %131 = vmatpush.bf16.msrb.mxu2 %v609_v6 }
  0x86   :  { %v66_v7 = vpop.f32.mrf.mxu0 }
  0x87   :  { %v67_v14 = vadd.f32 %v66_v7, %v35_v10 }
  0x8d   :  { %v98_v11 = vpop.f32.mrf.mxu2 }
  0x8e   :  { %v68_v12 = vpop.f32.mrf.mxu0  ;;  %v99_v13 = vadd.f32 %v98_v11, %v76_v9 }
  0x8f   :  { %v69_v15 = vadd.f32 %v68_v12, %v35_v10  ;;  %v670_v12 = vmov 32.0  }
  0x90   :  { %v103_v16 = vpack.c.bf16 %v99_v13, %v99_v13 }
  0x91   :  { %v71_v17 = vpack.c.bf16 %v69_v15, %v67_v14 }
  0x92   :  { %v250_v18 = vsel %vm248_vm1, %v103_v16, 0 }
  0x93   :  { %560 = vmatmul.msk.bf16.vlgmr.msrb.gmra.mxu2 %vm53_vm0, %v71_v17  ;;  %259 = vmatpush.bf16.msra.mxu3 %v250_v18 }
  0x95   :  { %v100_v19 = vpop.f32.mrf.mxu2 }
  0x96   :  { %v101_v20 = vadd.f32 %v100_v19, %v76_v9 }
  0x98   :  { %v104_v21 = vpack.c.bf16 %v101_v20, %v101_v20 }
  0x9a   :  { %v269_v22 = vsel %vm248_vm1, %v104_v21, 0 }
  0x9b   :  { %278 = vmatpush.bf16.msrb.mxu3 %v269_v22 }
 0x116   :  { %v133_v23 = vpop.f32.mrf.mxu2 }
 0x117   :  { %v138_v24 = vmul.f32 0.17677669, %v133_v23 }
 0x119   :  { %v141_v25 = vsel %vm140_vm2, %v138_v24, -inf }
 0x11a   :  { %v142_v26 = vrot.slane %v141_v25, 4 }
 0x11c   :  { %v143_v27 = vmax.f32 %v141_v25, %v142_v26 }
 0x11e   :  { %v144_v28 = vrot.slane %v143_v27, 2  ;;  %v135_v29 = vpop.f32.mrf.mxu2 }
 0x11f   :  { %v139_v30 = vmul.f32 0.17677669, %v135_v29 }
 0x120   :  { %v145_v31 = vmax.f32 %v143_v27, %v144_v28 }
 0x121   :  { %v148_v32 = vsel %vm140_vm2, %v139_v30, -inf }
 0x122   :  { %v146_v33 = vrot.slane %v145_v31, 1  ;;  %v149_v34 = vrot.slane %v148_v32, 4 }
 0x124   :  { %v147_v35 = vmax.f32 %v145_v31, %v146_v33  ;;  %v150_v36 = vmax.f32 %v148_v32, %v149_v34  ;;  %v612_v32 = vld [vmem:[%s815_s4 + $0x8] sm:$0xff]  ;;  %v611_v33 = vld [vmem:[%s815_s4] sm:$0xff] }
 0x125   :  { %368 = vmatpush.bf16.msrb.mxu0 %v612_v32 }
 0x126   :  { %v155_v37 = vsub.f32 %v138_v24, %v147_v35  ;;  %v151_v38 = vrot.slane %v150_v36, 2 }
 0x128   :  { %v157_v39 = vmul.f32 1.442695, %v155_v37  ;;  %v152_v40 = vmax.f32 %v150_v36, %v151_v38  ;;  %v620_v36 = vld [vmem:[%s816_s5 + $0x38] sm:$0xff] }
 0x129   :  { %369 = vmatpush.bf16.msrb.mxu0 %v611_v33  ;;  %444 = vmatpush.bf16.msra.mxu1 %v620_v36 }
 0x12a   :  { %626 = vpow2.f32 %v157_v39  ;;  %v153_v41 = vrot.slane %v152_v40, 1 }
 0x12c   :  { %v154_v42 = vmax.f32 %v152_v40, %v153_v41  ;;  %v619_v40 = vld [vmem:[%s816_s5 + $0x30] sm:$0xff] }
 0x12d   :  { %445 = vmatpush.bf16.msra.mxu1 %v619_v40 }
 0x12e   :  { %v156_v43 = vsub.f32 %v139_v30, %v154_v42 }
 0x130   :  { %v627_v44 = vpop.eup %626  ;;  %v159_v45 = vmul.f32 1.442695, %v156_v43  ;;  %v618_v43 = vld [vmem:[%s816_s5 + $0x28] sm:$0xff] }
 0x131   :  { %v161_v46 = vsel %vm140_vm2, %v627_v44, 0.0  ;;  %446 = vmatpush.bf16.msra.mxu1 %v618_v43 }
 0x132   :  { %v162_v47 = vrot.slane %v161_v46, 4  ;;  %628 = vpow2.f32 %v159_v45  ;;  %v617_v45 = vld [vmem:[%s816_s5 + $0x20] sm:$0xff] }
 0x134   :  { %v163_v48 = vadd.f32 %v162_v47, %v161_v46 }
 0x135   :  { %447 = vmatpush.bf16.msra.mxu1 %v617_v45 }
 0x136   :  { %v164_v49 = vrot.slane %v163_v48, 2 }
 0x138   :  { %v629_v50 = vpop.eup %628  ;;  %v165_v51 = vadd.f32 %v164_v49, %v163_v48 }
 0x139   :  { %v168_v52 = vsel %vm140_vm2, %v629_v50, 0.0 }
 0x13a   :  { %v169_v53 = vrot.slane %v168_v52, 4  ;;  %v166_v54 = vrot.slane %v165_v51, 1 }
 0x13c   :  { %v170_v55 = vadd.f32 %v169_v53, %v168_v52  ;;  %v167_v56 = vadd.f32 %v166_v54, %v165_v51  ;;  %v335_v54 = vperm.slane %v740_v8, 2 }
 0x13e   :  { %v171_v57 = vrot.slane %v170_v55, 2  ;;  %630 = vrcp.f32 %v167_v56 }
 0x140   :  { %v172_v58 = vadd.f32 %v171_v57, %v170_v55 }
 0x142   :  { %v173_v59 = vrot.slane %v172_v58, 1 }
 0x144   :  { %v631_v60 = vpop.eup %630  ;;  %v174_v61 = vadd.f32 %v173_v59, %v172_v58  ;;  %v338_v59 = vperm.slane %v740_v8, 3 }
 0x145   :  { %v177_v62 = vmul.f32 %v631_v60, %v627_v44 }
 0x146   :  { %632 = vrcp.f32 %v174_v61 }
 0x147   :  { %179 = vxpose.xlu0.b32.start.end [1/1] (short) (narrow) %v177_v62, 8  ;;  %634 = vrcp.f32 %v670_v12 }
 0x14c   :  { %v633_v63 = vpop.eup %632 }
 0x14d   :  { %v178_v0 = vmul.f32 %v633_v63, %v629_v50  ;;  %v635_v13 = vpop.eup %634 }
 0x14e   :  { %v291_v14 = vmul.f32 32.0, %v635_v13  ;;  %vm295_vm3 = vweird.f32 %v635_v13 }
 0x14f   :  { %211 = vxpose.xlu0.b32.start.end [1/1] (short) (narrow) %v178_v0, 8  ;;  %v616_v0 = vld [vmem:[%s816_s5 + $0x18] sm:$0xff] }
 0x150   :  { %v292_v15 = vsub.f32 1.0, %v291_v14  ;;  %448 = vmatpush.bf16.msra.mxu1 %v616_v0 }
 0x152   :  { %v293_v16 = vmul.f32 %v635_v13, %v292_v15 }
 0x154   :  { %v294_v17 = vadd.f32 %v635_v13, %v293_v16 }
 0x156   :  { %v753_v18 = vsel %vm295_vm3, %v635_v13, %v294_v17  ;;  %v395_v13 = vperm.slane %v740_v8, 6 }
 0x1eb   :  { %v195_v1 = vpop.trf.xlu0 }
 0x1ec   :  { %v243_v2 = vpack.c.bf16 %v195_v1, %v195_v1  ;;  %v615_v1 = vld [vmem:[%s816_s5 + $0x10] sm:$0xff] }
 0x1ed   :  { %449 = vmatpush.bf16.msra.mxu1 %v615_v1 }
 0x1ee   :  { %561 = vmatmul.msk.bf16.vlgmr.msra.gmra.mxu3 %vm140_vm2, %v243_v2  ;;  %v614_v2 = vld [vmem:[%s816_s5 + $0x8] sm:$0xff] }
 0x1f1   :  { %450 = vmatpush.bf16.msra.mxu1 %v614_v2 }
 0x1f3   :  { %v227_v3 = vpop.trf.xlu0 }
 0x1f4   :  { %v244_v4 = vpack.c.bf16 %v227_v3, %v227_v3  ;;  %v613_v3 = vld [vmem:[%s816_s5] sm:$0xff]  ;;  %s671_s5 = smov [#allocation2]  }
 0x1f5   :  { %451 = vmatpush.bf16.msra.mxu1 %v613_v3  ;;  %s516_s8 = sshll.u32 %s671_s5, 4  ;;  %s517_s8 = int_to_ptr.vmem [resolvable:$true] %s516_s8 }
 0x1fe   :  { %562 = vmatmul.msk.bf16.vlgmr.msrb.gmra.mxu3 %vm140_vm2, %v244_v4 }
 0x271   :  { %v261_v5 = vpop.f32.mrf.mxu3 }
 0x272   :  { %v284_v6 = vsel %vm53_vm0, %v261_v5, 0.0 }
 0x273   :  { %285 = vadd.xlane.f32.xlu1 %v284_v6 }
 0x279   :  { %v263_v7 = vpop.f32.mrf.mxu3 }
 0x281   :  { %v280_v9 = vpop.f32.mrf.mxu3 }
 0x282   :  { %v287_v10 = vsel %vm53_vm0, %v280_v9, 0.0 }
 0x283   :  { %288 = vadd.xlane.f32.xlu1 %v287_v10 }
 0x289   :  { %v282_v11 = vpop.f32.mrf.mxu3 }
 0x2e6   :  { %v286_v19 = vpop.xlane.xlu1 %285 }
 0x2e7   :  { %v297_v20 = vmul.f32 %v753_v18, %v286_v19 }
 0x2e9   :  { %v299_v21 = vsub.f32 %v261_v5, %v297_v20  ;;  %v346_v5 = vperm.slane %v740_v8, 7 }
 0x2eb   :  { %v301_v22 = vmul.f32 %v299_v21, %v299_v21 }
 0x2ed   :  { %v303_v23 = vsel %vm53_vm0, %v301_v22, 0.0 }
 0x2ee   :  { %304 = vadd.xlane.f32.xlu2 %v303_v23 }
 0x2f6   :  { %v289_v24 = vpop.xlane.xlu1 %288 }
 0x2f7   :  { %v298_v25 = vmul.f32 %v753_v18, %v289_v24 }
 0x2f9   :  { %v300_v26 = vsub.f32 %v280_v9, %v298_v25 }
 0x2fb   :  { %v302_v27 = vmul.f32 %v300_v26, %v300_v26 }
 0x2fd   :  { %v306_v28 = vsel %vm53_vm0, %v302_v27, 0.0 }
 0x2fe   :  { %307 = vadd.xlane.f32.xlu2 %v306_v28 }
 0x361   :  { %v305_v29 = vpop.xlane.xlu2 %304 }
 0x362   :  { %v309_v30 = vmul.f32 %v305_v29, %v753_v18 }
 0x364   :  { %v311_v31 = vadd.f32 1e-05, %v309_v30 }
 0x366   :  { %636 = vrsqrt.f32 %v311_v31  ;;  %vm319_vm5 = vweird.f32 %v311_v31 }
 0x36c   :  { %v637_v34 = vpop.eup %636 }
 0x36d   :  { %v314_v35 = vmul.f32 %v637_v34, %v311_v31  ;;  %vm320_vm4 = vweird.f32 %v637_v34 }
 0x36e   :  { %vm321_vm6 = vmor %vm319_vm5, %vm320_vm4 }
 0x36f   :  { %v315_v37 = vmul.f32 %v637_v34, %v314_v35 }
 0x371   :  { %v308_v38 = vpop.xlane.xlu2 %307  ;;  %v316_v42 = vmul.f32 0.5, %v315_v37 }
 0x372   :  { %v310_v39 = vmul.f32 %v308_v38, %v753_v18 }
 0x373   :  { %v317_v44 = vsub.f32 1.5, %v316_v42 }
 0x374   :  { %v312_v41 = vadd.f32 1e-05, %v310_v39 }
 0x375   :  { %v318_v47 = vmul.f32 %v637_v34, %v317_v44 }
 0x376   :  { %638 = vrsqrt.f32 %v312_v41  ;;  %vm329_vm8 = vweird.f32 %v312_v41 }
 0x377   :  { %v322_v50 = vsel %vm321_vm6, %v637_v34, %v318_v47  ;;  %v504_v47 = vperm.slane %v740_v8, 4 }
 0x378   :  { %v333_v53 = vmul.f32 %v322_v50, %v299_v21 }
 0x37a   :  { %v336_v58 = vmul.f32 %v335_v54, %v333_v53 }
 0x37c   :  { %v639_v46 = vpop.eup %638  ;;  %v339_v61 = vadd.f32 %v338_v59, %v336_v58 }
 0x37d   :  { %v324_v48 = vmul.f32 %v639_v46, %v312_v41  ;;  %vm330_vm7 = vweird.f32 %v639_v46 }
 0x37e   :  { %vm331_vm9 = vmor %vm329_vm8, %vm330_vm7 }
 0x37f   :  { %v325_v49 = vmul.f32 %v639_v46, %v324_v48 }
 0x381   :  { %v326_v51 = vmul.f32 0.5, %v325_v49 }
 0x383   :  { %v327_v52 = vsub.f32 1.5, %v326_v51 }
 0x385   :  { %v328_v55 = vmul.f32 %v639_v46, %v327_v52 }
 0x387   :  { %v332_v56 = vsel %vm331_vm9, %v639_v46, %v328_v55 }
 0x388   :  { %v334_v57 = vmul.f32 %v332_v56, %v300_v26 }
 0x38a   :  { %v337_v60 = vmul.f32 %v335_v54, %v334_v57 }
 0x38c   :  { %v340_v62 = vadd.f32 %v338_v59, %v337_v60 }
 0x38e   :  { %v341_v63 = vpack.c.bf16 %v340_v62, %v339_v61 }
 0x390   :  { %571 = vmatmul.msk.bf16.vlgmr.msrb.gmra.mxu0 %vm53_vm0, %v341_v63 }
 0x40d   :  { %v371_v4 = vpop.f32.mrf.mxu0 }
 0x40e   :  { %v372_v6 = vadd.f32 %v371_v4, %v346_v5 }
 0x410   :  { %v376_v10 = vmax.f32 %v372_v6, 0.0 }
 0x415   :  { %v373_v7 = vpop.f32.mrf.mxu0 }
 0x416   :  { %v374_v9 = vadd.f32 %v373_v7, %v346_v5 }
 0x418   :  { %v377_v11 = vmax.f32 %v374_v9, 0.0 }
 0x41a   :  { %v378_v12 = vpack.c.bf16 %v377_v11, %v376_v10 }
 0x41c   :  { %452 = vmatmul.bf16.vlgmr.msra.gmra.mxu1 %v378_v12 }
 0x499   :  { %v453_v14 = vpop.f32.mrf.mxu1 }
 0x49a   :  { %v454_v15 = vadd.f32 %v453_v14, %v395_v13 }
 0x49c   :  { %v458_v16 = vadd.f32 %v454_v15, %v339_v61 }
 0x49e   :  { %v460_v17 = vsel %vm53_vm0, %v458_v16, 0.0 }
 0x49f   :  { %461 = vadd.xlane.f32.xlu0 %v460_v17 }
 0x4a1   :  { %v455_v19 = vpop.f32.mrf.mxu1 }
 0x4a2   :  { %v456_v20 = vadd.f32 %v455_v19, %v395_v13 }
 0x4a4   :  { %v459_v21 = vadd.f32 %v456_v20, %v340_v62 }
 0x4a6   :  { %v463_v22 = vsel %vm53_vm0, %v459_v21, 0.0 }
 0x4a7   :  { %464 = vadd.xlane.f32.xlu1 %v463_v22 }
 0x512   :  { %v462_v23 = vpop.xlane.xlu0 %461 }
 0x513   :  { %v466_v24 = vmul.f32 %v462_v23, %v753_v18 }
 0x515   :  { %v468_v25 = vsub.f32 %v458_v16, %v466_v24 }
 0x517   :  { %v470_v26 = vmul.f32 %v468_v25, %v468_v25 }
 0x519   :  { %v472_v27 = vsel %vm53_vm0, %v470_v26, 0.0 }
 0x51a   :  { %v465_v28 = vpop.xlane.xlu1 %464  ;;  %473 = vadd.xlane.f32.xlu2 %v472_v27 }
 0x51b   :  { %v467_v29 = vmul.f32 %v465_v28, %v753_v18 }
 0x51d   :  { %v469_v30 = vsub.f32 %v459_v21, %v467_v29 }
 0x51f   :  { %v471_v31 = vmul.f32 %v469_v30, %v469_v30 }
 0x521   :  { %v475_v32 = vsel %vm53_vm0, %v471_v31, 0.0 }
 0x522   :  { %476 = vadd.xlane.f32.xlu1 %v475_v32 }
 0x58d   :  { %v474_v33 = vpop.xlane.xlu2 %473 }
 0x58e   :  { %v478_v34 = vmul.f32 %v474_v33, %v753_v18 }
 0x590   :  { %v480_v35 = vadd.f32 1e-05, %v478_v34 }
 0x592   :  { %640 = vrsqrt.f32 %v480_v35  ;;  %vm488_vm11 = vweird.f32 %v480_v35 }
 0x595   :  { %v477_v36 = vpop.xlane.xlu1 %476 }
 0x596   :  { %v479_v37 = vmul.f32 %v477_v36, %v753_v18  ;;  %v507_v18 = vperm.slane %v740_v8, 5 }
 0x598   :  { %v641_v38 = vpop.eup %640  ;;  %v481_v39 = vadd.f32 1e-05, %v479_v37 }
 0x599   :  { %v483_v40 = vmul.f32 %v641_v38, %v480_v35  ;;  %vm489_vm10 = vweird.f32 %v641_v38 }
 0x59a   :  { %642 = vrsqrt.f32 %v481_v39  ;;  %vm490_vm12 = vmor %vm488_vm11, %vm489_vm10  ;;  %vm498_vm14 = vweird.f32 %v481_v39 }
 0x59b   :  { %v484_v41 = vmul.f32 %v641_v38, %v483_v40 }
 0x59d   :  { %v485_v42 = vmul.f32 0.5, %v484_v41 }
 0x59f   :  { %v486_v43 = vsub.f32 1.5, %v485_v42 }
 0x5a0   :  { %v643_v44 = vpop.eup %642 }
 0x5a1   :  { %v487_v45 = vmul.f32 %v641_v38, %v486_v43  ;;  %v493_v46 = vmul.f32 %v643_v44, %v481_v39  ;;  %vm499_vm13 = vweird.f32 %v643_v44 }
 0x5a2   :  { %vm500_vm15 = vmor %vm498_vm14, %vm499_vm13 }
 0x5a3   :  { %v491_v48 = vsel %vm490_vm12, %v641_v38, %v487_v45  ;;  %v494_v49 = vmul.f32 %v643_v44, %v493_v46 }
 0x5a4   :  { %v502_v50 = vmul.f32 %v491_v48, %v468_v25 }
 0x5a5   :  { %v495_v51 = vmul.f32 0.5, %v494_v49 }
 0x5a6   :  { %v505_v52 = vmul.f32 %v504_v47, %v502_v50 }
 0x5a7   :  { %v496_v53 = vsub.f32 1.5, %v495_v51 }
 0x5a8   :  { %v508_v54 = vadd.f32 %v507_v18, %v505_v52 }
 0x5a9   :  { %v497_v55 = vmul.f32 %v643_v44, %v496_v53 }
 0x5aa   :  { %510 = vst.msk [vmem:[#allocation2] sm:$0xff] %vm53_vm0, %v508_v54 }
 0x5ab   :  { %v501_v56 = vsel %vm500_vm15, %v643_v44, %v497_v55 }
 0x5ac   :  { %v503_v57 = vmul.f32 %v501_v56, %v469_v30 }
 0x5ae   :  { %v506_v58 = vmul.f32 %v504_v47, %v503_v57 }
 0x5b0   :  { %v509_v8 = vadd.f32 %v507_v18, %v506_v58 }
 0x5b2   :  { %511 = vst.msk [vmem:[#allocation2 + $0x8] sm:$0xff] %vm53_vm0, %v509_v8 }
 0x5b3   :  { %524 = dma.vmem_to_hbm [thread:$0]  %s517_s8, 256, %s519_s11, [#allocation3], %s672_s12, %s672_s12, %s673_s2  }
 0x5b4   :  { %668 = dma.done.wait [#allocation3], 256  }
 0x5b5   :  { %669 = vsyncadd [#allocation3], 4294967040 }
 0x5b6   :  { %529 = vsyncpa [#allocation3], 1 }

// kernel: tpu_custom_call.1
= control target key start
LH: loop header
LB: loop body
LE: loop exit
PB: predicated region body
PF: predicated region fallthrough
CT: control target
= control target key end

     0   :  { %s811_s0 = inlined_call_operand.vmem [shape: bf16[16,32], index: 0, kind: input, shape index: {}]   ;;  %s812_s1 = inlined_call_operand.vmem [shape: bf16[32,8], index: 1, kind: input, shape index: {}]   ;;  %s813_s2 = inlined_call_operand.vmem [shape: bf16[32,32], index: 2, kind: input, shape index: {}]   ;;  %s814_s3 = inlined_call_operand.vmem [shape: bf16[32,32], index: 3, kind: input, shape index: {}]   ;;  %s815_s4 = inlined_call_operand.vmem [shape: bf16[32,128], index: 4, kind: input, shape index: {}]   ;;  %s816_s5 = inlined_call_operand.vmem [shape: bf16[128,32], index: 5, kind: input, shape index: {}]   ;;  %s817_s6 = inlined_call_operand.vmem [shape: f32[8,128], index: 6, kind: input, shape index: {}]   ;;  %s818_s7 = inlined_call_operand.hbm [shape: f32[16,32], index: 7, kind: output, shape index: {}]  }
   0x1   :  { %v606_v0 = vld [vmem:[%s813_s2 + $0x8] sm:$0xff]  ;;  %v605_v2 = vld [vmem:[%s813_s2] sm:$0xff] }
   0x2   :  { %v608_v1 = vld [vmem:[%s814_s3 + $0x8] sm:$0xff]  ;;  %63 = vmatpush.bf16.msra.mxu0 %v606_v0 }
   0x3   :  { %12 = vsyncpa [#allocation3], 0  ;;  %95 = vmatpush.bf16.msra.mxu2 %v608_v1  ;;  %v607_v3 = vld [vmem:[%s814_s3] sm:$0xff]  ;;  %v610_v4 = vld [vmem:[%s812_s1 + $0x8] sm:$0xff]  ;;  %vm53_vm0 = vcmask 261120   ;;  %vm248_vm1 = vcmask 1043456  }
   0x4   :  { %v604_v5 = vld [vmem:[%s811_s0] sm:$0xff]  ;;  %vm140_vm2 = vcmask 64512   ;;  %s518_s11 = sshll.u32 %s818_s7, 4  ;;  %s672_s12 = smov 128   ;;  %s519_s11 = int_to_ptr.hbm [resolvable:$true] %s518_s11 }
   0x5   :  { %v609_v6 = vld [vmem:[%s812_s1] sm:$0xff]  ;;  %s673_s2 = smov 8  }
   0x6   :  { %64 = vmatpush.bf16.msra.mxu0 %v605_v2  ;;  %v740_v8 = vld [vmem:[%s817_s6] sm:$0xff] }
   0x7   :  { %96 = vmatpush.bf16.msra.mxu2 %v607_v3  ;;  %v76_v9 = vperm.slane %v740_v8, 1  ;;  %v35_v10 = vperm.slane %v740_v8, 0 }
   0x9   :  { %542 = vmatmul.msk.bf16.vlgmr.msra.gmra.mxu0 %vm53_vm0, %v604_v5 }
   0xa   :  { %551 = vmatmul.msk.bf16.vlgmr.msra.gmra.mxu2 %vm53_vm0, %v604_v5 }
   0xb   :  { %130 = vmatpush.bf16.msrb.mxu2 %v610_v4 }
   0xf   :  { %131 = vmatpush.bf16.msrb.mxu2 %v609_v6 }
  0x86   :  { %v66_v7 = vpop.f32.mrf.mxu0 }
  0x87   :  { %v67_v14 = vadd.f32 %v66_v7, %v35_v10 }
  0x8d   :  { %v98_v11 = vpop.f32.mrf.mxu2 }
  0x8e   :  { %v68_v12 = vpop.f32.mrf.mxu0  ;;  %v99_v13 = vadd.f32 %v98_v11, %v76_v9 }
  0x8f   :  { %v69_v15 = vadd.f32 %v68_v12, %v35_v10  ;;  %v670_v12 = vmov 32.0  }
  0x90   :  { %v103_v16 = vpack.c.bf16 %v99_v13, %v99_v13 }
  0x91   :  { %v71_v17 = vpack.c.bf16 %v69_v15, %v67_v14 }
  0x92   :  { %v250_v18 = vsel %vm248_vm1, %v103_v16, 0 }
  0x93   :  { %560 = vmatmul.msk.bf16.vlgmr.msrb.gmra.mxu2 %vm53_vm0, %v71_v17  ;;  %259 = vmatpush.bf16.msra.mxu3 %v250_v18 }
  0x95   :  { %v100_v19 = vpop.f32.mrf.mxu2 }
  0x96   :  { %v101_v20 = vadd.f32 %v100_v19, %v76_v9 }
  0x98   :  { %v104_v21 = vpack.c.bf16 %v101_v20, %v101_v20 }
  0x9a   :  { %v269_v22 = vsel %vm248_vm1, %v104_v21, 0 }
  0x9b   :  { %278 = vmatpush.bf16.msrb.mxu3 %v269_v22 }
 0x116   :  { %v133_v23 = vpop.f32.mrf.mxu2 }
 0x117   :  { %v138_v24 = vmul.f32 0.17677669, %v133_v23 }
 0x119   :  { %v141_v25 = vsel %vm140_vm2, %v138_v24, -inf }
 0x11a   :  { %v142_v26 = vrot.slane %v141_v25, 4 }
 0x11c   :  { %v143_v27 = vmax.f32 %v141_v25, %v142_v26 }
 0x11e   :  { %v144_v28 = vrot.slane %v143_v27, 2  ;;  %v135_v29 = vpop.f32.mrf.mxu2 }
 0x11f   :  { %v139_v30 = vmul.f32 0.17677669, %v135_v29 }
 0x120   :  { %v145_v31 = vmax.f32 %v143_v27, %v144_v28 }
 0x121   :  { %v148_v32 = vsel %vm140_vm2, %v139_v30, -inf }
 0x122   :  { %v146_v33 = vrot.slane %v145_v31, 1  ;;  %v149_v34 = vrot.slane %v148_v32, 4 }
 0x124   :  { %v147_v35 = vmax.f32 %v145_v31, %v146_v33  ;;  %v150_v36 = vmax.f32 %v148_v32, %v149_v34  ;;  %v612_v32 = vld [vmem:[%s815_s4 + $0x8] sm:$0xff]  ;;  %v611_v33 = vld [vmem:[%s815_s4] sm:$0xff] }
 0x125   :  { %368 = vmatpush.bf16.msrb.mxu0 %v612_v32 }
 0x126   :  { %v155_v37 = vsub.f32 %v138_v24, %v147_v35  ;;  %v151_v38 = vrot.slane %v150_v36, 2 }
 0x128   :  { %v157_v39 = vmul.f32 1.442695, %v155_v37  ;;  %v152_v40 = vmax.f32 %v150_v36, %v151_v38  ;;  %v620_v36 = vld [vmem:[%s816_s5 + $0x38] sm:$0xff] }
 0x129   :  { %369 = vmatpush.bf16.msrb.mxu0 %v611_v33  ;;  %444 = vmatpush.bf16.msra.mxu1 %v620_v36 }
 0x12a   :  { %626 = vpow2.f32 %v157_v39  ;;  %v153_v41 = vrot.slane %v152_v40, 1 }
 0x12c   :  { %v154_v42 = vmax.f32 %v152_v40, %v153_v41  ;;  %v619_v40 = vld [vmem:[%s816_s5 + $0x30] sm:$0xff] }
 0x12d   :  { %445 = vmatpush.bf16.msra.mxu1 %v619_v40 }
 0x12e   :  { %v156_v43 = vsub.f32 %v139_v30, %v154_v42 }
 0x130   :  { %v627_v44 = vpop.eup %626  ;;  %v159_v45 = vmul.f32 1.442695, %v156_v43  ;;  %v618_v43 = vld [vmem:[%s816_s5 + $0x28] sm:$0xff] }
 0x131   :  { %v161_v46 = vsel %vm140_vm2, %v627_v44, 0.0  ;;  %446 = vmatpush.bf16.msra.mxu1 %v618_v43 }
 0x132   :  { %v162_v47 = vrot.slane %v161_v46, 4  ;;  %628 = vpow2.f32 %v159_v45  ;;  %v617_v45 = vld [vmem:[%s816_s5 + $0x20] sm:$0xff] }
 0x134   :  { %v163_v48 = vadd.f32 %v162_v47, %v161_v46 }
 0x135   :  { %447 = vmatpush.bf16.msra.mxu1 %v617_v45 }
 0x136   :  { %v164_v49 = vrot.slane %v163_v48, 2 }
 0x138   :  { %v629_v50 = vpop.eup %628  ;;  %v165_v51 = vadd.f32 %v164_v49, %v163_v48 }
 0x139   :  { %v168_v52 = vsel %vm140_vm2, %v629_v50, 0.0 }
 0x13a   :  { %v169_v53 = vrot.slane %v168_v52, 4  ;;  %v166_v54 = vrot.slane %v165_v51, 1 }
 0x13c   :  { %v170_v55 = vadd.f32 %v169_v53, %v168_v52  ;;  %v167_v56 = vadd.f32 %v166_v54, %v165_v51  ;;  %v335_v54 = vperm.slane %v740_v8, 2 }
 0x13e   :  { %v171_v57 = vrot.slane %v170_v55, 2  ;;  %630 = vrcp.f32 %v167_v56 }
 0x140   :  { %v172_v58 = vadd.f32 %v171_v57, %v170_v55 }
 0x142   :  { %v173_v59 = vrot.slane %v172_v58, 1 }
 0x144   :  { %v631_v60 = vpop.eup %630  ;;  %v174_v61 = vadd.f32 %v173_v59, %v172_v58  ;;  %v338_v59 = vperm.slane %v740_v8, 3 }
 0x145   :  { %v177_v62 = vmul.f32 %v631_v60, %v627_v44 }
 0x146   :  { %632 = vrcp.f32 %v174_v61 }
 0x147   :  { %179 = vxpose.xlu0.b32.start.end [1/1] (short) (narrow) %v177_v62, 8  ;;  %634 = vrcp.f32 %v670_v12 }
 0x14c   :  { %v633_v63 = vpop.eup %632 }
 0x14d   :  { %v178_v0 = vmul.f32 %v633_v63, %v629_v50  ;;  %v635_v13 = vpop.eup %634 }
 0x14e   :  { %v291_v14 = vmul.f32 32.0, %v635_v13  ;;  %vm295_vm3 = vweird.f32 %v635_v13 }
 0x14f   :  { %211 = vxpose.xlu0.b32.start.end [1/1] (short) (narrow) %v178_v0, 8  ;;  %v616_v0 = vld [vmem:[%s816_s5 + $0x18] sm:$0xff] }
 0x150   :  { %v292_v15 = vsub.f32 1.0, %v291_v14  ;;  %448 = vmatpush.bf16.msra.mxu1 %v616_v0 }
 0x152   :  { %v293_v16 = vmul.f32 %v635_v13, %v292_v15 }
 0x154   :  { %v294_v17 = vadd.f32 %v635_v13, %v293_v16 }
 0x156   :  { %v753_v18 = vsel %vm295_vm3, %v635_v13, %v294_v17  ;;  %v395_v13 = vperm.slane %v740_v8, 6 }
 0x1eb   :  { %v195_v1 = vpop.trf.xlu0 }
 0x1ec   :  { %v243_v2 = vpack.c.bf16 %v195_v1, %v195_v1  ;;  %v615_v1 = vld [vmem:[%s816_s5 + $0x10] sm:$0xff] }
 0x1ed   :  { %449 = vmatpush.bf16.msra.mxu1 %v615_v1 }
 0x1ee   :  { %561 = vmatmul.msk.bf16.vlgmr.msra.gmra.mxu3 %vm140_vm2, %v243_v2  ;;  %v614_v2 = vld [vmem:[%s816_s5 + $0x8] sm:$0xff] }
 0x1f1   :  { %450 = vmatpush.bf16.msra.mxu1 %v614_v2 }
 0x1f3   :  { %v227_v3 = vpop.trf.xlu0 }
 0x1f4   :  { %v244_v4 = vpack.c.bf16 %v227_v3, %v227_v3  ;;  %v613_v3 = vld [vmem:[%s816_s5] sm:$0xff]  ;;  %s671_s5 = smov [#allocation2]  }
 0x1f5   :  { %451 = vmatpush.bf16.msra.mxu1 %v613_v3  ;;  %s516_s8 = sshll.u32 %s671_s5, 4  ;;  %s517_s8 = int_to_ptr.vmem [resolvable:$true] %s516_s8 }
 0x1fe   :  { %562 = vmatmul.msk.bf16.vlgmr.msrb.gmra.mxu3 %vm140_vm2, %v244_v4 }
 0x271   :  { %v261_v5 = vpop.f32.mrf.mxu3 }
 0x272   :  { %v284_v6 = vsel %vm53_vm0, %v261_v5, 0.0 }
 0x273   :  { %285 = vadd.xlane.f32.xlu1 %v284_v6 }
 0x279   :  { %v263_v7 = vpop.f32.mrf.mxu3 }
 0x281   :  { %v280_v9 = vpop.f32.mrf.mxu3 }
 0x282   :  { %v287_v10 = vsel %vm53_vm0, %v280_v9, 0.0 }
 0x283   :  { %288 = vadd.xlane.f32.xlu1 %v287_v10 }
 0x289   :  { %v282_v11 = vpop.f32.mrf.mxu3 }
 0x2e6   :  { %v286_v19 = vpop.xlane.xlu1 %285 }
 0x2e7   :  { %v297_v20 = vmul.f32 %v753_v18, %v286_v19 }
 0x2e9   :  { %v299_v21 = vsub.f32 %v261_v5, %v297_v20  ;;  %v346_v5 = vperm.slane %v740_v8, 7 }
 0x2eb   :  { %v301_v22 = vmul.f32 %v299_v21, %v299_v21 }
 0x2ed   :  { %v303_v23 = vsel %vm53_vm0, %v301_v22, 0.0 }
 0x2ee   :  { %304 = vadd.xlane.f32.xlu2 %v303_v23 }
 0x2f6   :  { %v289_v24 = vpop.xlane.xlu1 %288 }
 0x2f7   :  { %v298_v25 = vmul.f32 %v753_v18, %v289_v24 }
 0x2f9   :  { %v300_v26 = vsub.f32 %v280_v9, %v298_v25 }
 0x2fb   :  { %v302_v27 = vmul.f32 %v300_v26, %v300_v26 }
 0x2fd   :  { %v306_v28 = vsel %vm53_vm0, %v302_v27, 0.0 }
 0x2fe   :  { %307 = vadd.xlane.f32.xlu2 %v306_v28 }
 0x361   :  { %v305_v29 = vpop.xlane.xlu2 %304 }
 0x362   :  { %v309_v30 = vmul.f32 %v305_v29, %v753_v18 }
 0x364   :  { %v311_v31 = vadd.f32 1e-05, %v309_v30 }
 0x366   :  { %636 = vrsqrt.f32 %v311_v31  ;;  %vm319_vm5 = vweird.f32 %v311_v31 }
 0x36c   :  { %v637_v34 = vpop.eup %636 }
 0x36d   :  { %v314_v35 = vmul.f32 %v637_v34, %v311_v31  ;;  %vm320_vm4 = vweird.f32 %v637_v34 }
 0x36e   :  { %vm321_vm6 = vmor %vm319_vm5, %vm320_vm4 }
 0x36f   :  { %v315_v37 = vmul.f32 %v637_v34, %v314_v35 }
 0x371   :  { %v308_v38 = vpop.xlane.xlu2 %307  ;;  %v316_v42 = vmul.f32 0.5, %v315_v37 }
 0x372   :  { %v310_v39 = vmul.f32 %v308_v38, %v753_v18 }
 0x373   :  { %v317_v44 = vsub.f32 1.5, %v316_v42 }
 0x374   :  { %v312_v41 = vadd.f32 1e-05, %v310_v39 }
 0x375   :  { %v318_v47 = vmul.f32 %v637_v34, %v317_v44 }
 0x376   :  { %638 = vrsqrt.f32 %v312_v41  ;;  %vm329_vm8 = vweird.f32 %v312_v41 }
 0x377   :  { %v322_v50 = vsel %vm321_vm6, %v637_v34, %v318_v47  ;;  %v504_v47 = vperm.slane %v740_v8, 4 }
 0x378   :  { %v333_v53 = vmul.f32 %v322_v50, %v299_v21 }
 0x37a   :  { %v336_v58 = vmul.f32 %v335_v54, %v333_v53 }
 0x37c   :  { %v639_v46 = vpop.eup %638  ;;  %v339_v61 = vadd.f32 %v338_v59, %v336_v58 }
 0x37d   :  { %v324_v48 = vmul.f32 %v639_v46, %v312_v41  ;;  %vm330_vm7 = vweird.f32 %v639_v46 }
 0x37e   :  { %vm331_vm9 = vmor %vm329_vm8, %vm330_vm7 }
 0x37f   :  { %v325_v49 = vmul.f32 %v639_v46, %v324_v48 }
 0x381   :  { %v326_v51 = vmul.f32 0.5, %v325_v49 }
 0x383   :  { %v327_v52 = vsub.f32 1.5, %v326_v51 }
 0x385   :  { %v328_v55 = vmul.f32 %v639_v46, %v327_v52 }
 0x387   :  { %v332_v56 = vsel %vm331_vm9, %v639_v46, %v328_v55 }
 0x388   :  { %v334_v57 = vmul.f32 %v332_v56, %v300_v26 }
 0x38a   :  { %v337_v60 = vmul.f32 %v335_v54, %v334_v57 }
 0x38c   :  { %v340_v62 = vadd.f32 %v338_v59, %v337_v60 }
 0x38e   :  { %v341_v63 = vpack.c.bf16 %v340_v62, %v339_v61 }
 0x390   :  { %571 = vmatmul.msk.bf16.vlgmr.msrb.gmra.mxu0 %vm53_vm0, %v341_v63 }
 0x40d   :  { %v371_v4 = vpop.f32.mrf.mxu0 }
 0x40e   :  { %v372_v6 = vadd.f32 %v371_v4, %v346_v5 }
 0x410   :  { %v376_v10 = vmax.f32 %v372_v6, 0.0 }
 0x415   :  { %v373_v7 = vpop.f32.mrf.mxu0 }
 0x416   :  { %v374_v9 = vadd.f32 %v373_v7, %v346_v5 }
 0x418   :  { %v377_v11 = vmax.f32 %v374_v9, 0.0 }
 0x41a   :  { %v378_v12 = vpack.c.bf16 %v377_v11, %v376_v10 }
 0x41c   :  { %452 = vmatmul.bf16.vlgmr.msra.gmra.mxu1 %v378_v12 }
 0x499   :  { %v453_v14 = vpop.f32.mrf.mxu1 }
 0x49a   :  { %v454_v15 = vadd.f32 %v453_v14, %v395_v13 }
 0x49c   :  { %v458_v16 = vadd.f32 %v454_v15, %v339_v61 }
 0x49e   :  { %v460_v17 = vsel %vm53_vm0, %v458_v16, 0.0 }
 0x49f   :  { %461 = vadd.xlane.f32.xlu0 %v460_v17 }
 0x4a1   :  { %v455_v19 = vpop.f32.mrf.mxu1 }
 0x4a2   :  { %v456_v20 = vadd.f32 %v455_v19, %v395_v13 }
 0x4a4   :  { %v459_v21 = vadd.f32 %v456_v20, %v340_v62 }
 0x4a6   :  { %v463_v22 = vsel %vm53_vm0, %v459_v21, 0.0 }
 0x4a7   :  { %464 = vadd.xlane.f32.xlu1 %v463_v22 }
 0x512   :  { %v462_v23 = vpop.xlane.xlu0 %461 }
 0x513   :  { %v466_v24 = vmul.f32 %v462_v23, %v753_v18 }
 0x515   :  { %v468_v25 = vsub.f32 %v458_v16, %v466_v24 }
 0x517   :  { %v470_v26 = vmul.f32 %v468_v25, %v468_v25 }
 0x519   :  { %v472_v27 = vsel %vm53_vm0, %v470_v26, 0.0 }
 0x51a   :  { %v465_v28 = vpop.xlane.xlu1 %464  ;;  %473 = vadd.xlane.f32.xlu2 %v472_v27 }
 0x51b   :  { %v467_v29 = vmul.f32 %v465_v28, %v753_v18 }
 0x51d   :  { %v469_v30 = vsub.f32 %v459_v21, %v467_v29 }
 0x51f   :  { %v471_v31 = vmul.f32 %v469_v30, %v469_v30 }
 0x521   :  { %v475_v32 = vsel %vm53_vm0, %v471_v31, 0.0 }
 0x522   :  { %476 = vadd.xlane.f32.xlu1 %v475_v32 }
 0x58d   :  { %v474_v33 = vpop.xlane.xlu2 %473 }
 0x58e   :  { %v478_v34 = vmul.f32 %v474_v33, %v753_v18 }
 0x590   :  { %v480_v35 = vadd.f32 1e-05, %v478_v34 }
 0x592   :  { %640 = vrsqrt.f32 %v480_v35  ;;  %vm488_vm11 = vweird.f32 %v480_v35 }
 0x595   :  { %v477_v36 = vpop.xlane.xlu1 %476 }
 0x596   :  { %v479_v37 = vmul.f32 %v477_v36, %v753_v18  ;;  %v507_v18 = vperm.slane %v740_v8, 5 }
 0x598   :  { %v641_v38 = vpop.eup %640  ;;  %v481_v39 = vadd.f32 1e-05, %v479_v37 }
 0x599   :  { %v483_v40 = vmul.f32 %v641_v38, %v480_v35  ;;  %vm489_vm10 = vweird.f32 %v641_v38 }
 0x59a   :  { %642 = vrsqrt.f32 %v481_v39  ;;  %vm490_vm12 = vmor %vm488_vm11, %vm489_vm10  ;;  %vm498_vm14 = vweird.f32 %v481_v39 }
 0x59b   :  { %v484_v41 = vmul.f32 %v641_v38, %v483_v40 }
 0x59d   :  { %v485_v42 = vmul.f32 0.5, %v484_v41 }
 0x59f   :  { %v486_v43 = vsub.f32 1.5, %v485_v42 }
 0x5a0   :  { %v643_v44 = vpop.eup %642 }
 0x5a1   :  { %v487_v45 = vmul.f32 %v641_v38, %v486_v43  ;;  %v493_v46 = vmul.f32 %v643_v44, %v481_v39  ;;  %vm499_vm13 = vweird.f32 %v643_v44 }
 0x5a2   :  { %vm500_vm15 = vmor %vm498_vm14, %vm499_vm13 }
 0x5a3   :  { %v491_v48 = vsel %vm490_vm12, %v641_v38, %v487_v45  ;;  %v494_v49 = vmul.f32 %v643_v44, %v493_v46 }
 0x5a4   :  { %v502_v50 = vmul.f32 %v491_v48, %v468_v25 }
 0x5a5   :  { %v495_v51 = vmul.f32 0.5, %v494_v49 }
 0x5a6   :  { %v505_v52 = vmul.f32 %v504_v47, %v502_v50 }
 0x5a7   :  { %v496_v53 = vsub.f32 1.5, %v495_v51 }
 0x5a8   :  { %v508_v54 = vadd.f32 %v507_v18, %v505_v52 }
 0x5a9   :  { %v497_v55 = vmul.f32 %v643_v44, %v496_v53 }
 0x5aa   :  { %510 = vst.msk [vmem:[#allocation2] sm:$0xff] %vm53_vm0, %v508_v54 }
 0x5ab   :  { %v501_v56 = vsel %vm500_vm15, %v643_v44, %v497_v55 }
 0x5ac   :  { %v503_v57 = vmul.f32 %v501_v56, %v469_v30 }
 0x5ae   :  { %v506_v58 = vmul.f32 %v504_v47, %v503_v57 }
 0x5b0   :  { %v509_v8 = vadd.f32 %v507_v18, %v506_v58 }
 0x5b2   :  { %511 = vst.msk [vmem:[#allocation2 + $0x8] sm:$0xff] %vm53_vm0, %v509_v8 }
 0x5b3   :  { %524 = dma.vmem_to_hbm [thread:$0]  %s517_s8, 256, %s519_s11, [#allocation3], %s672_s12, %s672_s12, %s673_s2  }
 0x5b4   :  { %668 = dma.done.wait [#allocation3], 256  }
 0x5b5   :  { %669 = vsyncadd [#allocation3], 4294967040 }
 0x5b6   :  { %529 = vsyncpa [#allocation3], 1 }

</bundles_post_ra>
